<compile_context>
chip_gen: v6e
topology: v6e:2x2x1
jax: 0.10.0
libtpu: 0.0.40
codegen_flags: <defaults>
</compile_context>

<pallas_src>
import jax
import jax.numpy as jnp
from jax.experimental import pallas as pl
from jax.experimental.pallas import tpu as pltpu


def _make_conv1d_kernel(kernel_size, pad, halo, t_out, compute_dtype):
    k, p = kernel_size, pad

    def conv1d_kernel(x_ref, w_ref, b_ref, o_ref, xpad_ref):
        # x_ref   : (Bt, T, F)            unpadded input slab
        # w_ref   : (k*F, F)              im2col weights
        # b_ref   : (1, F)                bias
        # o_ref   : (Bt, T_out, F)        output slab
        # xpad_ref: (Bt, T + 2*halo, F)   VMEM scratch holding the zero-padded slab
        Bt, T, F = x_ref.shape

        # Build the zero-padded slab inside the kernel (no extra HBM pad copy).
        # The scratch is re-zeroed every step, so correctness is independent of
        # how the parallel batch-tile axis is sharded across TensorCores.
        xpad_ref[...] = jnp.zeros(xpad_ref.shape, xpad_ref.dtype)
        xpad_ref[:, halo:halo + T, :] = x_ref[...]

        # im2col: k shifted (rows, F) views concatenated along the lane axis
        # -> a single MXU matmul with K = k*F and M = Bt*T_out rows.
        base = halo - p
        pieces = [
            xpad_ref[:, base + j: base + j + t_out, :].reshape(Bt * t_out, F)
            for j in range(k)
        ]
        lhs = jnp.concatenate(pieces, axis=-1) if k > 1 else pieces[0]
        if compute_dtype is not None:
            lhs = lhs.astype(compute_dtype)

        acc = jnp.dot(lhs, w_ref[...], preferred_element_type=jnp.float32)
        acc = acc + b_ref[...].astype(jnp.float32)      # (rows, F) + (1, F)
        o_ref[...] = acc.reshape(Bt, t_out, F).astype(o_ref.dtype)

    return conv1d_kernel


def _pick_batch_tile(B, T, target_rows=512, max_rows=4096):
    """Largest divisor of B (smallest-first scan) giving >= target_rows matmul
    rows while staying under a VMEM-friendly row cap."""
    best = 1
    for d in range(1, B + 1):
        if B % d:
            continue
        rows = d * T
        if rows <= max_rows:
            best = d
        if rows >= target_rows:
            break
    return best


def conv1d_layer(x, weight, bias, kernel_size, compute_dtype=None):
    """Pallas forward of Conv1dLayer.

    x:      (B, T, F)
    weight: (F_out, F_in, k)  -- PyTorch Conv1d layout (F_out == F_in == F)
    bias:   (F_out,)
    compute_dtype: optional matmul-operand dtype (e.g. jnp.bfloat16 on v6e/v7x);
                   accumulation stays f32.
    returns (B, T_out, F) with T_out = T + 2*((k-1)//2) - k + 1 (== T for odd k).
    """
    B, T, F = x.shape
    k = kernel_size
    p = (k - 1) // 2
    T_out = T + 2 * p - k + 1
    halo = ((p + 7) // 8) * 8 if p > 0 else 0   # 8-aligned halo for aligned stores

    # Weights -> im2col layout (k*F_in, F_out), reshaped/cast ONCE in the wrapper.
    w2 = jnp.transpose(weight, (2, 1, 0)).reshape(k * F, F)
    if compute_dtype is not None:
        w2 = w2.astype(compute_dtype)
    b2 = bias.reshape(1, F).astype(jnp.float32)

    # Pack several batch elements per grid step so the MXU sees a large M.
    # TODO(synk): for very large T, additionally tile the time axis with a halo
    # exchange (manual DMA / pl.Element) instead of a whole (T, F) slab per step.
    B_tile = _pick_batch_tile(B, T)
    grid = (B // B_tile,)

    kernel = _make_conv1d_kernel(k, p, halo, T_out, compute_dtype)

    bytes_accessed = (
        x.size * x.dtype.itemsize
        + w2.size * w2.dtype.itemsize
        + b2.size * b2.dtype.itemsize
        + B * T_out * F * x.dtype.itemsize
    )
    cost = pl.CostEstimate(
        flops=2 * B * T_out * F * F * k,
        transcendentals=0,
        bytes_accessed=bytes_accessed,
    )

    return pl.pallas_call(
        kernel,
        out_shape=jax.ShapeDtypeStruct((B, T_out, F), x.dtype),
        grid_spec=pltpu.PrefetchScalarGridSpec(
            num_scalar_prefetch=0,
            grid=grid,
            in_specs=[
                pl.BlockSpec((B_tile, T, F), lambda i: (i, 0, 0)),
                pl.BlockSpec((k * F, F), lambda i: (0, 0)),
                pl.BlockSpec((1, F), lambda i: (0, 0)),
            ],
            out_specs=pl.BlockSpec((B_tile, T_out, F), lambda i: (i, 0, 0)),
            scratch_shapes=[pltpu.VMEM((B_tile, T + 2 * halo, F), x.dtype)],
        ),
        compiler_params=pltpu.CompilerParams(
            dimension_semantics=("parallel",),
            vmem_limit_bytes=64 * 1024 * 1024,
        ),
        cost_estimate=cost,
    )(x, w2, b2)


def conv1d_layer_ref(x, weight, bias, kernel_size):
    """Plain-JAX reference matching PyTorch Conv1d semantics (for checking)."""
    p = (kernel_size - 1) // 2
    x_pad = jnp.pad(x, ((0, 0), (p, p), (0, 0)))
    T_out = x_pad.shape[1] - kernel_size + 1
    out = jnp.zeros((x.shape[0], T_out, weight.shape[0]), jnp.float32)
    for j in range(kernel_size):
        out = out + jnp.einsum(
            "bti,oi->bto", x_pad[:, j:j + T_out, :], weight[:, :, j]
        )
    return out + bias[None, None, :]


if __name__ == "__main__":
    # Module config (matches Conv1dLayer(n_features=32, kernel_size=7))
    n_features = 32
    kernel_size = 7
    B, T = 2, 16

    key = jax.random.PRNGKey(0)
    kx, kw, kb = jax.random.split(key, 3)

    # Deterministic parameter init (PyTorch-style uniform(-bound, bound))
    fan_in = n_features * kernel_size
    bound = 1.0 / (fan_in ** 0.5)
    weight = jax.random.uniform(
        kw, (n_features, n_features, kernel_size), jnp.float32, -bound, bound
    )
    bias = jax.random.uniform(kb, (n_features,), jnp.float32, -bound, bound)
    x = jax.random.normal(kx, (B, T, n_features), jnp.float32)

    y_ref = conv1d_layer_ref(x, weight, bias, kernel_size)

    # f32 path (v5e-friendly: no bf16 casts on the elementwise path).
    y = jax.block_until_ready(conv1d_layer(x, weight, bias, kernel_size))
    assert y.shape == y_ref.shape, (y.shape, y_ref.shape)
    assert jnp.allclose(y, y_ref, atol=1e-5, rtol=1e-5), float(
        jnp.max(jnp.abs(y - y_ref))
    )

    # bf16 MXU-operand path (v6e/v7x): f32 accumulation, looser tolerance.
    y_bf16 = jax.block_until_ready(
        conv1d_layer(x, weight, bias, kernel_size, compute_dtype=jnp.bfloat16)
    )
    assert jnp.allclose(y_bf16, y_ref, atol=1e-1, rtol=1e-1), float(
        jnp.max(jnp.abs(y_bf16 - y_ref))
    )

    print("KERNEL_OK")
</pallas_src>

<mosaic_0001>
module attributes {stable_mosaic.version = 11 : i64} {
  func.func @conv1d_kernel(%arg0: i32, %arg1: memref<2x16x32xf32, #tpu.memory_space<vmem>>, %arg2: memref<224x32xf32, #tpu.memory_space<vmem>>, %arg3: memref<1x32xf32, #tpu.memory_space<vmem>>, %arg4: memref<2x16x32xf32, #tpu.memory_space<vmem>>, %arg5: memref<2x32x32xf32, #tpu.memory_space<vmem>>) attributes {dimension_semantics = [#tpu.dimension_semantics<parallel>], iteration_bounds = array<i64: 1>, scalar_prefetch = 0 : i64, scratch_operands = 1 : i64, tpu.core_type = #tpu.core_type<tc>, window_params = [{transform_indices = @transform_0, window_bounds = array<i64: 2, 16, 32>}, {pipeline_mode = #tpu.pipeline_mode<synchronous>, transform_indices = @transform_1, window_bounds = array<i64: 224, 32>}, {pipeline_mode = #tpu.pipeline_mode<synchronous>, transform_indices = @transform_2, window_bounds = array<i64: 1, 32>}, {transform_indices = @transform_3, window_bounds = array<i64: 2, 16, 32>}]} {
    %cst = arith.constant 0.000000e+00 : f32
    %0 = vector.broadcast %cst : f32 to vector<2x32x32xf32>
    %c0 = arith.constant 0 : index
    %c0_0 = arith.constant 0 : index
    %c0_1 = arith.constant 0 : index
    %1 = vector.load %arg5[%c0, %c0_0, %c0_1] : memref<2x32x32xf32, #tpu.memory_space<vmem>>, vector<2x32x32xf32>
    tpu.vector_store %arg5[%c0, %c0_0, %c0_1], %0 {strides = array<i32>} : memref<2x32x32xf32, #tpu.memory_space<vmem>>, vector<2x32x32xf32>,
    %c0_2 = arith.constant 0 : index
    %c0_3 = arith.constant 0 : index
    %c0_4 = arith.constant 0 : index
    %2 = vector.load %arg1[%c0_2, %c0_3, %c0_4] : memref<2x16x32xf32, #tpu.memory_space<vmem>>, vector<2x16x32xf32>
    %c0_5 = arith.constant 0 : index
    %c8 = arith.constant 8 : index
    %c0_6 = arith.constant 0 : index
    %3 = vector.load %arg5[%c0_5, %c8, %c0_6] : memref<2x32x32xf32, #tpu.memory_space<vmem>>, vector<2x16x32xf32>
    tpu.vector_store %arg5[%c0_5, %c8, %c0_6], %2 {strides = array<i32>} : memref<2x32x32xf32, #tpu.memory_space<vmem>>, vector<2x16x32xf32>,
    %c0_7 = arith.constant 0 : index
    %c5 = arith.constant 5 : index
    %c0_8 = arith.constant 0 : index
    %4 = vector.load %arg5[%c0_7, %c5, %c0_8] : memref<2x32x32xf32, #tpu.memory_space<vmem>>, vector<2x16x32xf32>
    %5 = vector.shape_cast %4 : vector<2x16x32xf32> to vector<32x32xf32>
    %c0_9 = arith.constant 0 : index
    %c6 = arith.constant 6 : index
    %c0_10 = arith.constant 0 : index
    %6 = vector.load %arg5[%c0_9, %c6, %c0_10] : memref<2x32x32xf32, #tpu.memory_space<vmem>>, vector<2x16x32xf32>
    %7 = vector.shape_cast %6 : vector<2x16x32xf32> to vector<32x32xf32>
    %c0_11 = arith.constant 0 : index
    %c7 = arith.constant 7 : index
    %c0_12 = arith.constant 0 : index
    %8 = vector.load %arg5[%c0_11, %c7, %c0_12] : memref<2x32x32xf32, #tpu.memory_space<vmem>>, vector<2x16x32xf32>
    %9 = vector.shape_cast %8 : vector<2x16x32xf32> to vector<32x32xf32>
    %c0_13 = arith.constant 0 : index
    %c8_14 = arith.constant 8 : index
    %c0_15 = arith.constant 0 : index
    %10 = vector.load %arg5[%c0_13, %c8_14, %c0_15] : memref<2x32x32xf32, #tpu.memory_space<vmem>>, vector<2x16x32xf32>
    %11 = vector.shape_cast %10 : vector<2x16x32xf32> to vector<32x32xf32>
    %c0_16 = arith.constant 0 : index
    %c9 = arith.constant 9 : index
    %c0_17 = arith.constant 0 : index
    %12 = vector.load %arg5[%c0_16, %c9, %c0_17] : memref<2x32x32xf32, #tpu.memory_space<vmem>>, vector<2x16x32xf32>
    %13 = vector.shape_cast %12 : vector<2x16x32xf32> to vector<32x32xf32>
    %c0_18 = arith.constant 0 : index
    %c10 = arith.constant 10 : index
    %c0_19 = arith.constant 0 : index
    %14 = vector.load %arg5[%c0_18, %c10, %c0_19] : memref<2x32x32xf32, #tpu.memory_space<vmem>>, vector<2x16x32xf32>
    %15 = vector.shape_cast %14 : vector<2x16x32xf32> to vector<32x32xf32>
    %c0_20 = arith.constant 0 : index
    %c11 = arith.constant 11 : index
    %c0_21 = arith.constant 0 : index
    %16 = vector.load %arg5[%c0_20, %c11, %c0_21] : memref<2x32x32xf32, #tpu.memory_space<vmem>>, vector<2x16x32xf32>
    %17 = vector.shape_cast %16 : vector<2x16x32xf32> to vector<32x32xf32>
    %18 = tpu.concatenate %5, %7, %9, %11, %13, %15, %17 in 1 : vector<32x32xf32>, vector<32x32xf32>, vector<32x32xf32>, vector<32x32xf32>, vector<32x32xf32>, vector<32x32xf32>, vector<32x32xf32> -> vector<32x224xf32>
    %c0_22 = arith.constant 0 : index
    %c0_23 = arith.constant 0 : index
    %19 = vector.load %arg2[%c0_22, %c0_23] : memref<224x32xf32, #tpu.memory_space<vmem>>, vector<224x32xf32>
    %cst_24 = arith.constant dense<0.000000e+00> : vector<32x32xf32>
    %20 = tpu.matmul %18, %19, %cst_24 {dimension_numbers = #tpu.dot_dimension_numbers<[1], [0], [0], [1], [0, 0, 1, 1], [], []>} : vector<32x224xf32>, vector<224x32xf32>, vector<32x32xf32> -> vector<32x32xf32>
    %c0_25 = arith.constant 0 : index
    %c0_26 = arith.constant 0 : index
    %21 = vector.load %arg3[%c0_25, %c0_26] : memref<1x32xf32, #tpu.memory_space<vmem>>, vector<1x32xf32>
    %22 = vector.broadcast %21 : vector<1x32xf32> to vector<32x32xf32>
    %23 = arith.addf %20, %22 : vector<32x32xf32>
    %24 = vector.shape_cast %23 : vector<32x32xf32> to vector<2x16x32xf32>
    %c0_27 = arith.constant 0 : index
    %c0_28 = arith.constant 0 : index
    %c0_29 = arith.constant 0 : index
    %25 = vector.load %arg4[%c0_27, %c0_28, %c0_29] : memref<2x16x32xf32, #tpu.memory_space<vmem>>, vector<2x16x32xf32>
    tpu.vector_store %arg4[%c0_27, %c0_28, %c0_29], %24 {strides = array<i32>} : memref<2x16x32xf32, #tpu.memory_space<vmem>>, vector<2x16x32xf32>,
    return
  }
  func.func @transform_0(%arg0: i32) -> (i32, i32, i32) {
    %c0_i32 = arith.constant 0 : i32
    %c0_i32_0 = arith.constant 0 : i32
    %c0_i32_1 = arith.constant 0 : i32
    return %arg0, %c0_i32, %c0_i32_0 : i32, i32, i32
  }
  func.func @transform_1(%arg0: i32) -> (i32, i32) {
    %c0_i32 = arith.constant 0 : i32
    %c0_i32_0 = arith.constant 0 : i32
    %c0_i32_1 = arith.constant 0 : i32
    return %c0_i32, %c0_i32_0 : i32, i32
  }
  func.func @transform_2(%arg0: i32) -> (i32, i32) {
    %c0_i32 = arith.constant 0 : i32
    %c0_i32_0 = arith.constant 0 : i32
    %c0_i32_1 = arith.constant 0 : i32
    return %c0_i32, %c0_i32_0 : i32, i32
  }
  func.func @transform_3(%arg0: i32) -> (i32, i32, i32) {
    %c0_i32 = arith.constant 0 : i32
    %c0_i32_0 = arith.constant 0 : i32
    %c0_i32_1 = arith.constant 0 : i32
    return %arg0, %c0_i32, %c0_i32_0 : i32, i32, i32
  }
}

</mosaic_0001>

<bundles_post_ra>
// kernel: tpu_custom_call.1
= control target key start
LH: loop header
LB: loop body
LE: loop exit
PB: predicated region body
PF: predicated region fallthrough
CT: control target
= control target key end

     0   :  { %vm15_vm0 = vcmask 261120   ;;  %v434_v3 = vmov 0.0   ;;  %s435_s29 = smov 32   ;;  %s436_s7 = smov 64   ;;  %s681_s0 = inlined_call_operand.vmem [shape: f32[2,16,32], index: 0, kind: input, shape index: {}]   ;;  %s682_s1 = inlined_call_operand.vmem [shape: f32[224,32], index: 1, kind: input, shape index: {}]   ;;  %s683_s2 = inlined_call_operand.vmem [shape: f32[1,32], index: 2, kind: input, shape index: {}]   ;;  %s684_s3 = inlined_call_operand.hbm [shape: f32[2,16,32], index: 3, kind: output, shape index: {}]  }
   0x1   :  { %v26_v0 = vld [vmem:[%s681_s0 + $0x10] sm:$0xff]  ;;  %v27_v1 = vld [vmem:[%s681_s0 + $0x18] sm:$0xff]  ;;  %v24_v2 = vld [vmem:[%s681_s0] sm:$0xff]  ;;  %21 = vst.msk [vmem:[#allocation2 + $0x28] sm:$0xff] %vm15_vm0, %v434_v3  ;;  %209 = vmatprep.subr.mxu0 %v434_v3  ;;  %319 = vmatprep.subr.mxu1 %v434_v3 }
   0x2   :  { %22 = vst.msk [vmem:[#allocation2 + $0x30] sm:$0xff] %vm15_vm0, %v434_v3  ;;  %16 = vst.msk [vmem:[#allocation2] sm:$0xff] %vm15_vm0, %v434_v3  ;;  %v25_v4 = vld [vmem:[%s681_s0 + $0x8] sm:$0xff]  ;;  %v177_v5 = vld [vmem:[%s682_s1 + $0x78] sm:$0xff] }
   0x3   :  { %17 = vst.msk [vmem:[#allocation2 + $0x8] sm:$0xff] %vm15_vm0, %v434_v3  ;;  %18 = vst.msk [vmem:[#allocation2 + $0x10] sm:$0xff] %vm15_vm0, %v434_v3  ;;  %v176_v6 = vld [vmem:[%s682_s1 + $0x70] sm:$0xff]  ;;  %210 = vmatpush1.msra.mxu0 %v177_v5  ;;  %347 = vmatpush1.msra.mxu1 %v177_v5  ;;  %v175_v7 = vld [vmem:[%s682_s1 + $0x68] sm:$0xff] }
   0x4   :  { %19 = vst.msk [vmem:[#allocation2 + $0x18] sm:$0xff] %vm15_vm0, %v434_v3  ;;  %20 = vst.msk [vmem:[#allocation2 + $0x20] sm:$0xff] %vm15_vm0, %v434_v3  ;;  %211 = vmatprep.subr.mxu0 %v434_v3  ;;  %320 = vmatprep.subr.mxu1 %v434_v3  ;;  %v174_v8 = vld [vmem:[%s682_s1 + $0x60] sm:$0xff]  ;;  %v173_v9 = vld [vmem:[%s682_s1 + $0x58] sm:$0xff] }
   0x5   :  { %23 = vst.msk [vmem:[#allocation2 + $0x38] sm:$0xff] %vm15_vm0, %v434_v3  ;;  %30 = vst.msk [vmem:[#allocation2 + $0x28] sm:$0xff] %vm15_vm0, %v26_v0  ;;  %212 = vmatpush1.msra.mxu0 %v176_v6  ;;  %348 = vmatpush1.msra.mxu1 %v176_v6  ;;  %v172_v16 = vld [vmem:[%s682_s1 + $0x50] sm:$0xff]  ;;  %v171_v18 = vld [vmem:[%s682_s1 + $0x48] sm:$0xff] }
   0x6   :  { %31 = vst.msk [vmem:[#allocation2 + $0x30] sm:$0xff] %vm15_vm0, %v27_v1  ;;  %28 = vst.msk [vmem:[#allocation2 + $0x8] sm:$0xff] %vm15_vm0, %v24_v2  ;;  %213 = vmatprep.subr.mxu0 %v434_v3  ;;  %321 = vmatprep.subr.mxu1 %v434_v3  ;;  %v170_v20 = vld [vmem:[%s682_s1 + $0x40] sm:$0xff]  ;;  %v169_v28 = vld [vmem:[%s682_s1 + $0x38] sm:$0xff] }
   0x7   :  { %29 = vst.msk [vmem:[#allocation2 + $0x10] sm:$0xff] %vm15_vm0, %v25_v4  ;;  %214 = vmatpush1.msra.mxu0 %v175_v7  ;;  %349 = vmatpush1.msra.mxu1 %v175_v7  ;;  %v168_v30 = vld [vmem:[%s682_s1 + $0x30] sm:$0xff] }
   0x8   :  { %215 = vmatprep.subr.mxu0 %v434_v3  ;;  %322 = vmatprep.subr.mxu1 %v434_v3 }
   0x9   :  { %216 = vmatpush1.msra.mxu0 %v174_v8  ;;  %350 = vmatpush1.msra.mxu1 %v174_v8 }
   0xa   :  { %217 = vmatprep.subr.mxu0 %v434_v3  ;;  %323 = vmatprep.subr.mxu1 %v434_v3 }
   0xb   :  { %218 = vmatpush1.msra.mxu0 %v173_v9  ;;  %351 = vmatpush1.msra.mxu1 %v173_v9 }
   0xc   :  { %v38_v12 = vld [vmem:[#allocation2 + $0x26] sm:$0xff]  ;;  %219 = vmatprep.subr.mxu0 %v434_v3  ;;  %324 = vmatprep.subr.mxu1 %v434_v3 }
   0xd   :  { %v54_v10 = vld [vmem:[#allocation2 + $0x2a] sm:$0xff]  ;;  %220 = vmatpush1.msra.mxu0 %v172_v16  ;;  %352 = vmatpush1.msra.mxu1 %v172_v16 }
   0xe   :  { %v36_v11 = vld [vmem:[#allocation2 + $0x6] sm:$0xff]  ;;  %116 = vrot.lane.b32.xlu1 %v54_v10, %s435_s29  ;;  %221 = vmatprep.subr.mxu0 %v434_v3  ;;  %v37_v22 = vld [vmem:[#allocation2 + $0xe] sm:$0xff] }
   0xf   :  { %v382_v13 = vpack.i.bf16 %v38_v12, %v36_v11  ;;  %v40_v14 = vld [vmem:[#allocation2 + $0x7] sm:$0xff]  ;;  %325 = vmatprep.subr.mxu1 %v434_v3  ;;  %222 = vmatpush1.msra.mxu0 %v171_v18 }
  0x10   :  { %v42_v15 = vld [vmem:[#allocation2 + $0x27] sm:$0xff]  ;;  %353 = vmatpush1.msra.mxu1 %v171_v18  ;;  %223 = vmatprep.subr.mxu0 %v434_v3 }
  0x11   :  { %v387_v17 = vpack.i.bf16 %v42_v15, %v40_v14  ;;  %383 = vrot.lane.b32.xlu0 %v382_v13, %s435_s29  ;;  %v52_v19 = vld [vmem:[#allocation2 + $0xa] sm:$0xff]  ;;  %326 = vmatprep.subr.mxu1 %v434_v3 }
  0x12   :  { %v58_v21 = vld [vmem:[#allocation2 + $0x2b] sm:$0xff]  ;;  %224 = vmatpush1.msra.mxu0 %v170_v20  ;;  %354 = vmatpush1.msra.mxu1 %v170_v20 }
  0x13   :  { %388 = vrot.lane.b32.xlu1 %v387_v17, %s436_s7  ;;  %v39_v23 = vld [vmem:[#allocation2 + $0x2e] sm:$0xff]  ;;  %225 = vmatprep.subr.mxu0 %v434_v3 }
  0x14   :  { %v56_v24 = vld [vmem:[#allocation2 + $0xb] sm:$0xff]  ;;  %v397_v27 = vpack.i.bf16 %v39_v23, %v37_v22  ;;  %327 = vmatprep.subr.mxu1 %v434_v3 }
  0x15   :  { %112 = vrot.lane.b32.xlu0 %v52_v19, %s435_s29  ;;  %v44_v25 = vld [vmem:[#allocation2 + $0x8] sm:$0xff] }
  0x16   :  { %v46_v26 = vld [vmem:[#allocation2 + $0x28] sm:$0xff] }
  0x17   :  { %132 = vrot.lane.b32.xlu1 %v58_v21, %s436_s7  ;;  %v392_v29 = vpack.i.bf16 %v46_v26, %v44_v25 }
  0x19   :  { %128 = vrot.lane.b32.xlu0 %v56_v24, %s436_s7 }
  0x1a   :  { %8 = vsyncpa [#allocation4], 0  ;;  %226 = vmatpush1.msra.mxu0 %v169_v28  ;;  %355 = vmatpush1.msra.mxu1 %v169_v28  ;;  %v55_v31 = vld [vmem:[#allocation2 + $0x32] sm:$0xff]  ;;  %v167_v32 = vld [vmem:[%s682_s1 + $0x28] sm:$0xff]  ;;  %s437_s16 = smov 96   ;;  %vm149_vm1 = vcmask 785408  }
  0x1b   :  { %398 = vrot.lane.b32.xlu1 %v397_v27, %s435_s29  ;;  %227 = vmatprep.subr.mxu0 %v434_v3  ;;  %v53_v33 = vld [vmem:[#allocation2 + $0x12] sm:$0xff]  ;;  %v166_v36 = vld [vmem:[%s682_s1 + $0x20] sm:$0xff]  ;;  %v163_v45 = vld [vmem:[%s682_s1 + $0x8] sm:$0xff]  ;;  %vm144_vm2 = vcmask 523264   ;;  %s438_s0 = smov [#allocation3]  }
  0x1c   :  { %328 = vmatprep.subr.mxu1 %v434_v3  ;;  %228 = vmatpush1.msra.mxu0 %v168_v30  ;;  %v41_v34 = vld [vmem:[#allocation2 + $0xf] sm:$0xff]  ;;  %v165_v41 = vld [vmem:[%s682_s1 + $0x18] sm:$0xff]  ;;  %v162_v46 = vld [vmem:[%s682_s1] sm:$0xff]  ;;  %s303_s24 = sshll.u32 %s438_s0, 4  ;;  %s304_s24 = int_to_ptr.vmem [resolvable:$true] %s303_s24 }
  0x1d   :  { %393 = vrot.lane.b32.xlu0 %v392_v29, %s437_s16  ;;  %356 = vmatpush1.msra.mxu1 %v168_v30  ;;  %v43_v35 = vld [vmem:[#allocation2 + $0x2f] sm:$0xff]  ;;  %v189_v47 = vld [vmem:[%s682_s1 + $0xd8] sm:$0xff]  ;;  %v186_v50 = vld [vmem:[%s682_s1 + $0xc0] sm:$0xff]  ;;  %p417_p1 = scmp.lt.s32.totalorder %s304_s24, %s304_s24 }
  0x1e   :  { %229 = vmatprep.subr.mxu0 %v434_v3  ;;  %329 = vmatprep.subr.mxu1 %v434_v3  ;;  %v57_v37 = vld [vmem:[#allocation2 + $0x13] sm:$0xff]  ;;  %v402_v40 = vpack.i.bf16 %v43_v35, %v41_v34  ;;  %v187_v49 = vld [vmem:[%s682_s1 + $0xc8] sm:$0xff]  ;;  %v182_v54 = vld [vmem:[%s682_s1 + $0xa0] sm:$0xff] }
  0x1f   :  { %118 = vrot.lane.b32.xlu1 %v55_v31, %s435_s29  ;;  %230 = vmatpush1.msra.mxu0 %v167_v32  ;;  %v45_v38 = vld [vmem:[#allocation2 + $0x10] sm:$0xff]  ;;  %v185_v51 = vld [vmem:[%s682_s1 + $0xb8] sm:$0xff]  ;;  %v183_v53 = vld [vmem:[%s682_s1 + $0xa8] sm:$0xff] }
  0x20   :  { %v47_v39 = vld [vmem:[#allocation2 + $0x30] sm:$0xff]  ;;  %357 = vmatpush1.msra.mxu1 %v167_v32  ;;  %231 = vmatprep.subr.mxu0 %v434_v3  ;;  %v181_v55 = vld [vmem:[%s682_s1 + $0x98] sm:$0xff]  ;;  %v179_v57 = vld [vmem:[%s682_s1 + $0x88] sm:$0xff] }
  0x21   :  { %114 = vrot.lane.b32.xlu0 %v53_v33, %s435_s29  ;;  %330 = vmatprep.subr.mxu1 %v434_v3  ;;  %v407_v42 = vpack.i.bf16 %v47_v39, %v45_v38  ;;  %v164_v43 = vld [vmem:[%s682_s1 + $0x10] sm:$0xff]  ;;  %v178_v58 = vld [vmem:[%s682_s1 + $0x80] sm:$0xff] }
  0x22   :  { %232 = vmatpush1.msra.mxu0 %v166_v36  ;;  %358 = vmatpush1.msra.mxu1 %v166_v36  ;;  %v59_v44 = vld [vmem:[#allocation2 + $0x33] sm:$0xff]  ;;  %v50_v62 = vld [vmem:[#allocation2 + $0x29] sm:$0xff] }
  0x23   :  { %130 = vrot.lane.b32.xlu1 %v57_v37, %s436_s7  ;;  %233 = vmatprep.subr.mxu0 %v434_v3  ;;  %v188_v48 = vld [vmem:[%s682_s1 + $0xd0] sm:$0xff]  ;;  %v32_v8 = vld [vmem:[#allocation2 + $0x5] sm:$0xff] }
  0x24   :  { %331 = vmatprep.subr.mxu1 %v434_v3  ;;  %234 = vmatpush1.msra.mxu0 %v165_v41  ;;  %v184_v52 = vld [vmem:[%s682_s1 + $0xb0] sm:$0xff]  ;;  %v34_v9 = vld [vmem:[#allocation2 + $0x25] sm:$0xff] }
  0x25   :  { %403 = vrot.lane.b32.xlu0 %v402_v40, %s436_s7  ;;  %359 = vmatpush1.msra.mxu1 %v165_v41  ;;  %v180_v56 = vld [vmem:[%s682_s1 + $0x90] sm:$0xff] }
  0x26   :  { %235 = vmatprep.subr.mxu0 %v434_v3  ;;  %332 = vmatprep.subr.mxu1 %v434_v3  ;;  %v48_v0 = vld [vmem:[#allocation2 + $0x9] sm:$0xff]  ;;  %v49_v20 = vld [vmem:[#allocation2 + $0x11] sm:$0xff] }
  0x27   :  { %408 = vrot.lane.b32.xlu1 %v407_v42, %s437_s16  ;;  %236 = vmatpush1.msra.mxu0 %v164_v43  ;;  %v33_v31 = vld [vmem:[#allocation2 + $0xd] sm:$0xff] }
  0x28   :  { %360 = vmatpush1.msra.mxu1 %v164_v43  ;;  %237 = vmatprep.subr.mxu0 %v434_v3  ;;  %v35_v32 = vld [vmem:[#allocation2 + $0x2d] sm:$0xff] }
  0x29   :  { %134 = vrot.lane.b32.xlu0 %v59_v44, %s436_s7  ;;  %333 = vmatprep.subr.mxu1 %v434_v3  ;;  %v51_v34 = vld [vmem:[#allocation2 + $0x31] sm:$0xff] }
  0x2a   :  { %238 = vmatpush1.msra.mxu0 %v163_v45  ;;  %361 = vmatpush1.msra.mxu1 %v163_v45 }
  0x2b   :  { %239 = vmatprep.subr.mxu0 %v434_v3  ;;  %334 = vmatprep.subr.mxu1 %v434_v3 }
  0x2c   :  { %240 = vmatpush1.msra.mxu0 %v162_v46  ;;  %362 = vmatpush1.msra.mxu1 %v162_v46 }
  0x2d   :  { %249 = vmatprep.subr.mxu0 %v434_v3  ;;  %335 = vmatprep.subr.mxu1 %v434_v3 }
  0x2e   :  { %250 = vmatpush2.msra.mxu0 %v189_v47  ;;  %363 = vmatpush2.msra.mxu1 %v189_v47 }
  0x2f   :  { %251 = vmatprep.subr.mxu0 %v434_v3  ;;  %336 = vmatprep.subr.mxu1 %v434_v3 }
  0x30   :  { %252 = vmatpush2.msra.mxu0 %v188_v48  ;;  %364 = vmatpush2.msra.mxu1 %v188_v48 }
  0x31   :  { %253 = vmatprep.subr.mxu0 %v434_v3  ;;  %337 = vmatprep.subr.mxu1 %v434_v3 }
  0x32   :  { %254 = vmatpush2.msra.mxu0 %v187_v49  ;;  %365 = vmatpush2.msra.mxu1 %v187_v49  ;;  %v314_v49 = vld [vmem:[%s683_s2] ss:$0 sm:$0xff]  ;;  %s412_s2 = scalar_lea.vmem %s304_s24, 512 }
  0x33   :  { %255 = vmatprep.subr.mxu0 %v434_v3  ;;  %338 = vmatprep.subr.mxu1 %v434_v3  ;;  %p413_p0 = scmp.ne.s32.totalorder %s304_s24, %s412_s2  ;;  %p418_p2 = scmp.lt.s32.totalorder %s412_s2, %s412_s2 }
  0x34   :  { %256 = vmatpush2.msra.mxu0 %v186_v50  ;;  %366 = vmatpush2.msra.mxu1 %v186_v50 }
  0x35   :  { %257 = vmatprep.subr.mxu0 %v434_v3  ;;  %339 = vmatprep.subr.mxu1 %v434_v3  ;;  %p419_p3 = por %p418_p2, %p417_p1 }
  0x36   :  { %258 = vmatpush2.msra.mxu0 %v185_v51  ;;  %367 = vmatpush2.msra.mxu1 %v185_v51 }
  0x37   :  { %259 = vmatprep.subr.mxu0 %v434_v3  ;;  %340 = vmatprep.subr.mxu1 %v434_v3  ;;  %p420_p4 = pnand %p419_p3, %p413_p0 }
  0x38   :  { %260 = vmatpush2.msra.mxu0 %v184_v52  ;;  %368 = vmatpush2.msra.mxu1 %v184_v52 }
  0x39   :  { %261 = vmatprep.subr.mxu0 %v434_v3  ;;  %341 = vmatprep.subr.mxu1 %v434_v3 }
  0x3a   :  { %262 = vmatpush2.msra.mxu0 %v183_v53  ;;  %369 = vmatpush2.msra.mxu1 %v183_v53 }
  0x3b   :  { %263 = vmatprep.subr.mxu0 %v434_v3  ;;  %342 = vmatprep.subr.mxu1 %v434_v3 }
  0x3c   :  { %264 = vmatpush2.msra.mxu0 %v182_v54  ;;  %370 = vmatpush2.msra.mxu1 %v182_v54 }
  0x3d   :  { %265 = vmatprep.subr.mxu0 %v434_v3  ;;  %343 = vmatprep.subr.mxu1 %v434_v3 }
  0x3e   :  { %266 = vmatpush2.msra.mxu0 %v181_v55  ;;  %371 = vmatpush2.msra.mxu1 %v181_v55 }
  0x3f   :  { %267 = vmatprep.subr.mxu0 %v434_v3  ;;  %344 = vmatprep.subr.mxu1 %v434_v3 }
  0x40   :  { %268 = vmatpush2.msra.mxu0 %v180_v56  ;;  %372 = vmatpush2.msra.mxu1 %v180_v56 }
  0x41   :  { %269 = vmatprep.subr.mxu0 %v434_v3  ;;  %345 = vmatprep.subr.mxu1 %v434_v3 }
  0x42   :  { %270 = vmatpush2.msra.mxu0 %v179_v57  ;;  %373 = vmatpush2.msra.mxu1 %v179_v57 }
  0x43   :  { %271 = vmatprep.subr.mxu0 %v434_v3  ;;  %346 = vmatprep.subr.mxu1 %v434_v3 }
  0x44   :  { %272 = vmatpush2.msra.mxu0 %v178_v58  ;;  %374 = vmatpush2.msra.mxu1 %v178_v58 }
  0x80   :  { %v117_v59 = vpop.permute.xlu1 %116 }
  0x81   :  { %v156_v1 = vsel %vm15_vm0, %v50_v62, %v117_v59 }
  0x83   :  { %v384_v60 = vpop.permute.xlu0 %383 }
  0x84   :  { %v386_v4 = vunpack.i.h.bf16 %v384_v60  ;;  %v385_v5 = vunpack.i.l.bf16 %v384_v60 }
  0x85   :  { %v389_v61 = vpop.permute.xlu1 %388 }
  0x86   :  { %v391_v11 = vunpack.i.h.bf16 %v389_v61  ;;  %v390_v12 = vunpack.i.l.bf16 %v389_v61  ;;  %v140_v14 = vsel %vm15_vm0, %v32_v8, %v385_v5  ;;  %v142_v15 = vsel %vm15_vm0, %v34_v9, %v386_v4 }
  0x87   :  { %v113_v63 = vpop.permute.xlu0 %112 }
  0x88   :  { %v154_v7 = vsel %vm15_vm0, %v48_v0, %v113_v63  ;;  %v145_v21 = vsel %vm144_vm2, %v140_v14, %v390_v12  ;;  %v147_v22 = vsel %vm144_vm2, %v142_v15, %v391_v11 }
  0x89   :  { %v133_v2 = vpop.permute.xlu1 %132 }
  0x8a   :  { %v160_v6 = vsel %vm144_vm2, %v156_v1, %v133_v2 }
  0x8b   :  { %317 = vmatprep.mubr.msk.f32.mxu1 %vm149_vm1, %v160_v6  ;;  %v129_v3 = vpop.permute.xlu0 %128 }
  0x8c   :  { %v158_v10 = vsel %vm144_vm2, %v154_v7, %v129_v3 }
  0x8d   :  { %v399_v13 = vpop.permute.xlu1 %398  ;;  %315 = vmatprep.mubr.msk.f32.mxu0 %vm149_vm1, %v158_v10 }
  0x8e   :  { %v401_v27 = vunpack.i.h.bf16 %v399_v13  ;;  %v400_v28 = vunpack.i.l.bf16 %v399_v13 }
  0x8f   :  { %v394_v16 = vpop.permute.xlu0 %393 }
  0x90   :  { %v396_v17 = vunpack.i.h.bf16 %v394_v16  ;;  %v395_v18 = vunpack.i.l.bf16 %v394_v16  ;;  %v141_v38 = vsel %vm15_vm0, %v33_v31, %v400_v28  ;;  %v143_v39 = vsel %vm15_vm0, %v35_v32, %v401_v27 }
  0x91   :  { %v119_v19 = vpop.permute.xlu1 %118 }
  0x92   :  { %v150_v23 = vsel %vm149_vm1, %v145_v21, %v395_v18  ;;  %v152_v24 = vsel %vm149_vm1, %v147_v22, %v396_v17  ;;  %v157_v44 = vsel %vm15_vm0, %v51_v34, %v119_v19 }
  0x93   :  { %v115_v25 = vpop.permute.xlu0 %114  ;;  %274 = vmatmul.mubr.f32.vlgmr.msra.gmra.mxu0 %v150_v23  ;;  %284 = vmatmul.mubr.f32.vlgmr.msra.gmra.mxu1 %v152_v24 }
  0x94   :  { %v155_v26 = vsel %vm15_vm0, %v49_v20, %v115_v25 }
  0x95   :  { %v131_v29 = vpop.permute.xlu1 %130 }
  0x96   :  { %v159_v30 = vsel %vm144_vm2, %v155_v26, %v131_v29 }
  0x97   :  { %v404_v33 = vpop.permute.xlu0 %403  ;;  %316 = vmatprep.mubr.msk.f32.mxu0 %vm149_vm1, %v159_v30 }
  0x98   :  { %v406_v35 = vunpack.i.h.bf16 %v404_v33  ;;  %v405_v36 = vunpack.i.l.bf16 %v404_v33 }
  0x99   :  { %v409_v37 = vpop.permute.xlu1 %408 }
  0x9a   :  { %v411_v40 = vunpack.i.h.bf16 %v409_v37  ;;  %v410_v41 = vunpack.i.l.bf16 %v409_v37  ;;  %v146_v42 = vsel %vm144_vm2, %v141_v38, %v405_v36  ;;  %v148_v43 = vsel %vm144_vm2, %v143_v39, %v406_v35 }
  0x9b   :  { %v135_v45 = vpop.permute.xlu0 %134 }
  0x9c   :  { %v161_v46 = vsel %vm144_vm2, %v157_v44, %v135_v45  ;;  %v151_v47 = vsel %vm149_vm1, %v146_v42, %v410_v41  ;;  %v153_v48 = vsel %vm149_vm1, %v148_v43, %v411_v40 }
  0x9d   :  { %279 = vmatmul.mubr.f32.gmra.mxu0 %v151_v47  ;;  %318 = vmatprep.mubr.msk.f32.mxu1 %vm149_vm1, %v161_v46 }
  0x9e   :  { %289 = vmatmul.mubr.f32.gmra.mxu1 %v153_v48 }
 0x153   :  { %v275_v50 = vpop.f32.mrf.mxu0  ;;  %v285_v51 = vpop.f32.mrf.mxu1 }
 0x154   :  { %v276_v52 = vadd.f32 %v314_v49, %v275_v50  ;;  %v286_v53 = vadd.f32 %v314_v49, %v285_v51 }
 0x155   :  { %v277_v54 = vpop.f32.mrf.mxu0  ;;  %v287_v55 = vpop.f32.mrf.mxu1 }
 0x156   :  { %294 = vst.msk [vmem:[#allocation3] sm:$0xff] %vm15_vm0, %v276_v52  ;;  %296 = vst.msk [vmem:[#allocation3 + $0x10] sm:$0xff] %vm15_vm0, %v286_v53 }
 0x15d   :  { %v280_v56 = vpop.f32.mrf.mxu0 }
 0x15e   :  { %v281_v57 = vadd.f32 %v314_v49, %v280_v56  ;;  %v290_v58 = vpop.f32.mrf.mxu1 }
 0x15f   :  { %v291_v59 = vadd.f32 %v314_v49, %v290_v58  ;;  %v282_v60 = vpop.f32.mrf.mxu0 }
 0x160   :  { %295 = vst.msk [vmem:[#allocation3 + $0x8] sm:$0xff] %vm15_vm0, %v281_v57  ;;  %v292_v61 = vpop.f32.mrf.mxu1 }
 0x161   :  { %297 = vst.msk [vmem:[#allocation3 + $0x18] sm:$0xff] %vm15_vm0, %v291_v59 }
 0x162   :  { %423 = shalt.err (!%p420_p4)
}
 0x163   :  { %s439_s25 = smov 128   ;;  %s440_s26 = smov 8  }
 0x164   :  { %309 = dma.vmem_to_hbm [thread:$0]  %s304_s24, 512, %s684_s3, [#allocation4], %s439_s25, %s439_s25, %s440_s26  }
 0x165   :  { %432 = dma.done.wait [#allocation4], 512  }
 0x166   :  { %433 = vsyncadd [#allocation4], 4294966784 }
 0x167   :  { %313 = vsyncpa [#allocation4], 1 }

</bundles_post_ra>
